<compile_context>
chip_gen: v5e
topology: v5e:2x2
jax: 0.10.0
libtpu: 0.0.40
codegen_flags: <defaults>
</compile_context>

<pallas_src>
import jax
import jax.numpy as jnp
from jax.experimental import pallas as pl
from jax.experimental.pallas import tpu as pltpu


def cubic_kernel(params_ref, x_ref, o_ref):
    # params_ref: SMEM (4,) f32 -> [a, b, c, d] scalars.
    a = params_ref[0]
    b = params_ref[1]
    c = params_ref[2]
    d = params_ref[3]
    x = x_ref[...]
    # Horner form of a*x^3 + b*x^2 + c*x + d; f32 params promote bf16 inputs.
    y = ((a * x + b) * x + c) * x + d
    o_ref[...] = y.astype(o_ref.dtype)


def _ceil_div(a, b):
    return -(-a // b)


def _choose_tile_rows(rows, lane_width, itemsize, target_block_bytes,
                      small_slab_bytes=2 << 20):
    """Pick a row-tile: whole slab for small inputs, else ~target-sized blocks
    with dtype-aware sublane rounding and an even grid for v7x megacore."""
    slab_bytes = rows * lane_width * itemsize
    if slab_bytes <= small_slab_bytes or rows <= 8:
        return rows  # single block == full array; no (8,128) constraint.

    sub = max(8, 32 // itemsize)  # 8 for f32, 16 for bf16, 32 for int8/fp8
    bytes_per_row = lane_width * itemsize
    tile_rows = max(sub, (target_block_bytes // bytes_per_row) // sub * sub)
    if tile_rows >= rows:
        return rows

    grid_n = _ceil_div(rows, tile_rows)
    # Prefer an even grid so both v7x TensorCores get equal work.
    if grid_n % 2 == 1:
        grid_n += 1
        tile_rows = max(sub, _ceil_div(_ceil_div(rows, grid_n), sub) * sub)
        tile_rows = min(tile_rows, rows)
    return tile_rows


def cubic_forward(x, params, *, target_block_bytes=4 << 20):
    """Elementwise cubic polynomial.

    x:      any-shaped float array.
    params: (4,) float32 array [a, b, c, d] (packed once by the caller).
    """
    orig_shape = x.shape
    dtype = x.dtype
    total = int(x.size)
    itemsize = jnp.dtype(dtype).itemsize

    # Widest lane width that divides the flattened size -> copy-free reshape.
    lane_width = None
    for cand in (2048, 1024, 512, 256, 128):
        if total % cand == 0:
            lane_width = cand
            break

    if lane_width is None:
        # TODO(synk): ragged totals (not a multiple of 128) still take a
        # padded-copy path (one extra HBM pass); a masked boundary-block
        # kernel would avoid it.
        lane_width = 128
        padded_total = _ceil_div(total, lane_width) * lane_width
        x_flat = jnp.pad(jnp.ravel(x), (0, padded_total - total))
    else:
        padded_total = total
        x_flat = jnp.ravel(x)

    rows = padded_total // lane_width
    x2d = x_flat.reshape(rows, lane_width)

    tile_rows = _choose_tile_rows(rows, lane_width, itemsize, target_block_bytes)
    grid_n = _ceil_div(rows, tile_rows)

    out2d = pl.pallas_call(
        cubic_kernel,
        out_shape=jax.ShapeDtypeStruct((rows, lane_width), dtype),
        grid_spec=pl.GridSpec(
            grid=(grid_n,),
            in_specs=[
                pl.BlockSpec(memory_space=pltpu.MemorySpace.SMEM),        # params (4,)
                pl.BlockSpec((tile_rows, lane_width), lambda i: (i, 0)),  # x tile
            ],
            out_specs=pl.BlockSpec((tile_rows, lane_width), lambda i: (i, 0)),
        ),
        compiler_params=pltpu.CompilerParams(
            dimension_semantics=("parallel",),
            # 2 (in) + 2 (out) double-buffered 4 MiB blocks = 16 MiB live;
            # raise v5e's 16 MiB scoped default so the same tiling fits there.
            vmem_limit_bytes=32 << 20,
        ),
    )(params, x2d)

    out_flat = out2d.reshape(-1)
    if padded_total != total:
        out_flat = out_flat[:total]
    return out_flat.reshape(orig_shape)


if __name__ == "__main__":
    key = jax.random.PRNGKey(0)
    k_a, k_b, k_c, k_d, k_x = jax.random.split(key, 5)

    # nn.Parameter(torch.randn(1)) equivalents.
    a = jax.random.normal(k_a, (1,), dtype=jnp.float32)
    b = jax.random.normal(k_b, (1,), dtype=jnp.float32)
    c = jax.random.normal(k_c, (1,), dtype=jnp.float32)
    d = jax.random.normal(k_d, (1,), dtype=jnp.float32)

    # Pack parameters once (single (4,) SMEM operand).
    params = jnp.concatenate([a, b, c, d]).astype(jnp.float32)

    # Small input: 256 samples with feature dim 128 (copy-free reshape path).
    x = jax.random.normal(k_x, (256, 128), dtype=jnp.float32)

    out = jax.block_until_ready(cubic_forward(x, params))

    # Reference check (same semantics as the PyTorch forward).
    ref = a[0] * x ** 3 + b[0] * x ** 2 + c[0] * x + d[0]
    assert out.shape == x.shape
    assert jnp.allclose(out, ref, atol=1e-4, rtol=1e-4), "mismatch vs reference"

    print("KERNEL_OK")
</pallas_src>

<mosaic_0001>
module attributes {stable_mosaic.version = 11 : i64} {
  func.func @cubic_kernel(%arg0: i32, %arg1: memref<4xf32, #tpu.memory_space<smem>>, %arg2: memref<16x2048xf32, #tpu.memory_space<vmem>>, %arg3: memref<16x2048xf32, #tpu.memory_space<vmem>>) attributes {dimension_semantics = [#tpu.dimension_semantics<parallel>], iteration_bounds = array<i64: 1>, scalar_prefetch = 0 : i64, scratch_operands = 0 : i64, tpu.core_type = #tpu.core_type<tc>, window_params = [{transform_indices = @transform_0, window_bounds = array<i64: 4>}, {transform_indices = @transform_1, window_bounds = array<i64: 16, 2048>}, {transform_indices = @transform_2, window_bounds = array<i64: 16, 2048>}]} {
    %c0 = arith.constant 0 : index
    %0 = memref.load %arg1[%c0] : memref<4xf32, #tpu.memory_space<smem>>
    %c1 = arith.constant 1 : index
    %1 = memref.load %arg1[%c1] : memref<4xf32, #tpu.memory_space<smem>>
    %c2 = arith.constant 2 : index
    %2 = memref.load %arg1[%c2] : memref<4xf32, #tpu.memory_space<smem>>
    %c3 = arith.constant 3 : index
    %3 = memref.load %arg1[%c3] : memref<4xf32, #tpu.memory_space<smem>>
    %c0_0 = arith.constant 0 : index
    %c0_1 = arith.constant 0 : index
    %4 = vector.load %arg2[%c0_0, %c0_1] : memref<16x2048xf32, #tpu.memory_space<vmem>>, vector<16x2048xf32>
    %5 = vector.broadcast %0 : f32 to vector<16x2048xf32>
    %6 = arith.mulf %5, %4 : vector<16x2048xf32>
    %7 = vector.broadcast %1 : f32 to vector<16x2048xf32>
    %8 = arith.addf %6, %7 : vector<16x2048xf32>
    %9 = arith.mulf %8, %4 : vector<16x2048xf32>
    %10 = vector.broadcast %2 : f32 to vector<16x2048xf32>
    %11 = arith.addf %9, %10 : vector<16x2048xf32>
    %12 = arith.mulf %11, %4 : vector<16x2048xf32>
    %13 = vector.broadcast %3 : f32 to vector<16x2048xf32>
    %14 = arith.addf %12, %13 : vector<16x2048xf32>
    %c0_2 = arith.constant 0 : index
    %c0_3 = arith.constant 0 : index
    %15 = vector.load %arg3[%c0_2, %c0_3] : memref<16x2048xf32, #tpu.memory_space<vmem>>, vector<16x2048xf32>
    tpu.vector_store %arg3[%c0_2, %c0_3], %14 {strides = array<i32>} : memref<16x2048xf32, #tpu.memory_space<vmem>>, vector<16x2048xf32>,
    return
  }
  func.func @transform_0(%arg0: i32) -> i32 {
    %c0_i32 = arith.constant 0 : i32
    %c0_i32_0 = arith.constant 0 : i32
    return %c0_i32 : i32
  }
  func.func @transform_1(%arg0: i32) -> (i32, i32) {
    %c0_i32 = arith.constant 0 : i32
    %c0_i32_0 = arith.constant 0 : i32
    return %arg0, %c0_i32 : i32, i32
  }
  func.func @transform_2(%arg0: i32) -> (i32, i32) {
    %c0_i32 = arith.constant 0 : i32
    %c0_i32_0 = arith.constant 0 : i32
    return %arg0, %c0_i32 : i32, i32
  }
}

</mosaic_0001>

<bundles_post_ra>
// kernel: tpu_custom_call.1
= control target key start
LH: loop header
LB: loop body
LE: loop exit
PB: predicated region body
PF: predicated region fallthrough
CT: control target
= control target key end

     0   :  { %7 = vsyncpa [#allocation5], 0  ;;  %s570_s0 = inlined_call_operand.hbm [shape: f32[4], index: 0, kind: input, shape index: {}]   ;;  %s571_s1 = inlined_call_operand.hbm [shape: f32[16,2048], index: 1, kind: input, shape index: {}]   ;;  %s572_s2 = inlined_call_operand.hbm [shape: f32[16,2048], index: 2, kind: output, shape index: {}]  }
   0x1   :  { %8 = vsyncpa [#allocation3], 0 }
   0x2   :  { %9 = vsyncpa [#allocation4], 0  ;;  %s15_s11 = sshll.u32 %s570_s0, 4  ;;  %s23_s14 = sshll.u32 %s571_s1, 4  ;;  %s16_s11 = int_to_ptr.hbm [resolvable:$true] %s15_s11  ;;  %s24_s14 = int_to_ptr.hbm [resolvable:$true] %s23_s14 }
   0x3   :  { %s399_s15 = smov [#allocation2]   ;;  %s400_s16 = smov [#allocation6]  }
   0x4   :  { %18 = dma.hbm_to_smem %s16_s11, 16, %s399_s15, [#allocation5]  }
   0x5   :  { %s25_s17 = sshll.u32 %s400_s16, 4  ;;  %s401_s18 = smov 2048   ;;  %s26_s17 = int_to_ptr.vmem [resolvable:$true] %s25_s17 }
   0x6   :  { %s402_s19 = smov 128  }
   0x7   :  { %31 = dma.hbm_to_vmem [thread:$0]  %s24_s14, 4096, %s26_s17, [#allocation3], %s401_s18, %s401_s18, %s402_s19  }
   0x8   :  { %393 = dma.done.wait [#allocation5], 16  }
   0x9   :  { %394 = vsyncadd [#allocation5], 4294967280 }
   0xa   :  { %395 = dma.done.wait [#allocation3], 4096  }
   0xb   :  { %396 = vsyncadd [#allocation3], 4294963200 }
   0xc   :  { %40 = sfence }
   0xd   :  { %s41_s0 = sld [smem:[#allocation2]]  ;;  %v45_v0 = vld [vmem:[#allocation6] sm:$0xff]  ;;  %v46_v1 = vld [vmem:[#allocation6 + $0x8] sm:$0xff]  ;;  %v47_v2 = vld [vmem:[#allocation6 + $0x10] sm:$0xff]  ;;  %s403_s22 = smov [#allocation7]  }
   0xe   :  { %s325_s20 = sld [smem:[#allocation2 + $0x1]]  ;;  %v48_v3 = vld [vmem:[#allocation6 + $0x18] sm:$0xff]  ;;  %v49_v4 = vld [vmem:[#allocation6 + $0x20] sm:$0xff]  ;;  %v50_v5 = vld [vmem:[#allocation6 + $0x28] sm:$0xff]  ;;  %s309_s23 = sshll.u32 %s403_s22, 4  ;;  %s310_s23 = int_to_ptr.vmem [resolvable:$true] %s309_s23 }
   0xf   :  { %s326_s1 = sld [smem:[#allocation2 + $0x2]]  ;;  %v51_v11 = vld [vmem:[#allocation6 + $0x30] sm:$0xff]  ;;  %v52_v16 = vld [vmem:[#allocation6 + $0x38] sm:$0xff]  ;;  %v53_v49 = vld [vmem:[#allocation6 + $0x40] sm:$0xff]  ;;  %s311_s26 = sshll.u32 %s572_s2, 4  ;;  %s312_s26 = int_to_ptr.hbm [resolvable:$true] %s311_s26 }
  0x10   :  { %s327_s21 = sld [smem:[#allocation2 + $0x3]]  ;;  %v54_v50 = vld [vmem:[#allocation6 + $0x48] sm:$0xff]  ;;  %v55_v51 = vld [vmem:[#allocation6 + $0x50] sm:$0xff]  ;;  %v56_v56 = vld [vmem:[#allocation6 + $0x58] sm:$0xff] }
  0x11   :  { %v57_v57 = vld [vmem:[#allocation6 + $0x60] sm:$0xff]  ;;  %v58_v58 = vld [vmem:[#allocation6 + $0x68] sm:$0xff] }
  0x13   :  { %v428_v6 = vstv %s41_s0 }
  0x14   :  { %v78_v7 = vmul.f32 %v428_v6, %v45_v0  ;;  %v431_v8 = vstv %s325_s20  ;;  %v79_v9 = vmul.f32 %v428_v6, %v46_v1  ;;  %v80_v10 = vmul.f32 %v428_v6, %v47_v2 }
  0x15   :  { %v435_v12 = vstv %s326_s1  ;;  %v81_v13 = vmul.f32 %v428_v6, %v48_v3  ;;  %v82_v14 = vmul.f32 %v428_v6, %v49_v4  ;;  %v83_v15 = vmul.f32 %v428_v6, %v50_v5 }
  0x16   :  { %v111_v17 = vadd.f32 %v431_v8, %v78_v7  ;;  %v441_v18 = vstv %s327_s21  ;;  %v112_v19 = vadd.f32 %v431_v8, %v79_v9  ;;  %v113_v20 = vadd.f32 %v431_v8, %v80_v10  ;;  %v60_v10 = vld [vmem:[#allocation6 + $0x78] sm:$0xff] }
  0x17   :  { %v114_v21 = vadd.f32 %v431_v8, %v81_v13  ;;  %v115_v22 = vadd.f32 %v431_v8, %v82_v14  ;;  %v116_v23 = vadd.f32 %v431_v8, %v83_v15  ;;  %v84_v24 = vmul.f32 %v428_v6, %v51_v11 }
  0x18   :  { %v143_v25 = vmul.f32 %v111_v17, %v45_v0  ;;  %v144_v26 = vmul.f32 %v112_v19, %v46_v1  ;;  %v145_v27 = vmul.f32 %v113_v20, %v47_v2  ;;  %v85_v28 = vmul.f32 %v428_v6, %v52_v16 }
  0x19   :  { %v146_v29 = vmul.f32 %v114_v21, %v48_v3  ;;  %v147_v30 = vmul.f32 %v115_v22, %v49_v4  ;;  %v148_v31 = vmul.f32 %v116_v23, %v50_v5  ;;  %v117_v32 = vadd.f32 %v431_v8, %v84_v24 }
  0x1a   :  { %v176_v33 = vadd.f32 %v435_v12, %v143_v25  ;;  %v177_v34 = vadd.f32 %v435_v12, %v144_v26  ;;  %v178_v35 = vadd.f32 %v435_v12, %v145_v27  ;;  %v118_v36 = vadd.f32 %v431_v8, %v85_v28 }
  0x1b   :  { %v179_v37 = vadd.f32 %v435_v12, %v146_v29  ;;  %v180_v38 = vadd.f32 %v435_v12, %v147_v30  ;;  %v181_v39 = vadd.f32 %v435_v12, %v148_v31  ;;  %v149_v40 = vmul.f32 %v117_v32, %v51_v11 }
  0x1c   :  { %v208_v41 = vmul.f32 %v176_v33, %v45_v0  ;;  %v209_v42 = vmul.f32 %v177_v34, %v46_v1  ;;  %v210_v43 = vmul.f32 %v178_v35, %v47_v2  ;;  %v150_v44 = vmul.f32 %v118_v36, %v52_v16 }
  0x1d   :  { %v211_v45 = vmul.f32 %v179_v37, %v48_v3  ;;  %v212_v46 = vmul.f32 %v180_v38, %v49_v4  ;;  %v213_v47 = vmul.f32 %v181_v39, %v50_v5  ;;  %v182_v48 = vadd.f32 %v435_v12, %v149_v40  ;;  %v59_v3 = vld [vmem:[#allocation6 + $0x70] sm:$0xff] }
  0x1e   :  { %v241_v52 = vadd.f32 %v441_v18, %v208_v41  ;;  %v242_v53 = vadd.f32 %v441_v18, %v209_v42  ;;  %v243_v54 = vadd.f32 %v441_v18, %v210_v43  ;;  %v183_v55 = vadd.f32 %v435_v12, %v150_v44 }
  0x1f   :  { %v244_v59 = vadd.f32 %v441_v18, %v211_v45  ;;  %v245_v60 = vadd.f32 %v441_v18, %v212_v46  ;;  %v246_v61 = vadd.f32 %v441_v18, %v213_v47  ;;  %v214_v62 = vmul.f32 %v182_v48, %v51_v11  ;;  %v61_v45 = vld [vmem:[#allocation6 + $0x80] sm:$0xff]  ;;  %v62_v46 = vld [vmem:[#allocation6 + $0x88] sm:$0xff]  ;;  %v63_v47 = vld [vmem:[#allocation6 + $0x90] sm:$0xff] }
  0x20   :  { %273 = vst [vmem:[#allocation7] sm:$0xff] %v241_v52  ;;  %v215_v63 = vmul.f32 %v183_v55, %v52_v16  ;;  %v86_v0 = vmul.f32 %v428_v6, %v53_v49  ;;  %v87_v1 = vmul.f32 %v428_v6, %v54_v50  ;;  %v88_v2 = vmul.f32 %v428_v6, %v55_v51 }
  0x21   :  { %274 = vst [vmem:[#allocation7 + $0x8] sm:$0xff] %v242_v53  ;;  %v247_v4 = vadd.f32 %v441_v18, %v214_v62  ;;  %v89_v5 = vmul.f32 %v428_v6, %v56_v56  ;;  %v90_v7 = vmul.f32 %v428_v6, %v57_v57  ;;  %v91_v9 = vmul.f32 %v428_v6, %v58_v58 }
  0x22   :  { %275 = vst [vmem:[#allocation7 + $0x10] sm:$0xff] %v243_v54  ;;  %v248_v11 = vadd.f32 %v441_v18, %v215_v63  ;;  %v119_v13 = vadd.f32 %v431_v8, %v86_v0  ;;  %v120_v14 = vadd.f32 %v431_v8, %v87_v1  ;;  %v121_v15 = vadd.f32 %v431_v8, %v88_v2  ;;  %v67_v63 = vld [vmem:[#allocation6 + $0xb0] sm:$0xff] }
  0x23   :  { %276 = vst [vmem:[#allocation7 + $0x18] sm:$0xff] %v244_v59  ;;  %v122_v16 = vadd.f32 %v431_v8, %v89_v5  ;;  %v123_v17 = vadd.f32 %v431_v8, %v90_v7  ;;  %v124_v19 = vadd.f32 %v431_v8, %v91_v9  ;;  %v92_v20 = vmul.f32 %v428_v6, %v59_v3  ;;  %v68_v5 = vld [vmem:[#allocation6 + $0xb8] sm:$0xff] }
  0x24   :  { %277 = vst [vmem:[#allocation7 + $0x20] sm:$0xff] %v245_v60  ;;  %v151_v21 = vmul.f32 %v119_v13, %v53_v49  ;;  %v152_v22 = vmul.f32 %v120_v14, %v54_v50  ;;  %v153_v23 = vmul.f32 %v121_v15, %v55_v51  ;;  %v93_v24 = vmul.f32 %v428_v6, %v60_v10 }
  0x25   :  { %278 = vst [vmem:[#allocation7 + $0x28] sm:$0xff] %v246_v61  ;;  %v154_v25 = vmul.f32 %v122_v16, %v56_v56  ;;  %v155_v26 = vmul.f32 %v123_v17, %v57_v57  ;;  %v156_v27 = vmul.f32 %v124_v19, %v58_v58  ;;  %v125_v28 = vadd.f32 %v431_v8, %v92_v20 }
  0x26   :  { %279 = vst [vmem:[#allocation7 + $0x30] sm:$0xff] %v247_v4  ;;  %v184_v29 = vadd.f32 %v435_v12, %v151_v21  ;;  %v185_v30 = vadd.f32 %v435_v12, %v152_v22  ;;  %v186_v31 = vadd.f32 %v435_v12, %v153_v23  ;;  %v126_v32 = vadd.f32 %v431_v8, %v93_v24 }
  0x27   :  { %280 = vst [vmem:[#allocation7 + $0x38] sm:$0xff] %v248_v11  ;;  %v187_v33 = vadd.f32 %v435_v12, %v154_v25  ;;  %v188_v34 = vadd.f32 %v435_v12, %v155_v26  ;;  %v189_v35 = vadd.f32 %v435_v12, %v156_v27  ;;  %v157_v36 = vmul.f32 %v125_v28, %v59_v3 }
  0x28   :  { %v216_v37 = vmul.f32 %v184_v29, %v53_v49  ;;  %v217_v38 = vmul.f32 %v185_v30, %v54_v50  ;;  %v218_v39 = vmul.f32 %v186_v31, %v55_v51  ;;  %v158_v40 = vmul.f32 %v126_v32, %v60_v10  ;;  %v64_v49 = vld [vmem:[#allocation6 + $0x98] sm:$0xff]  ;;  %v65_v50 = vld [vmem:[#allocation6 + $0xa0] sm:$0xff]  ;;  %v66_v51 = vld [vmem:[#allocation6 + $0xa8] sm:$0xff] }
  0x29   :  { %v219_v41 = vmul.f32 %v187_v33, %v56_v56  ;;  %v220_v42 = vmul.f32 %v188_v34, %v57_v57  ;;  %v221_v43 = vmul.f32 %v189_v35, %v58_v58  ;;  %v190_v44 = vadd.f32 %v435_v12, %v157_v36 }
  0x2a   :  { %v249_v48 = vadd.f32 %v441_v18, %v216_v37  ;;  %v250_v52 = vadd.f32 %v441_v18, %v217_v38  ;;  %v251_v53 = vadd.f32 %v441_v18, %v218_v39  ;;  %v191_v54 = vadd.f32 %v435_v12, %v158_v40 }
  0x2b   :  { %v252_v55 = vadd.f32 %v441_v18, %v219_v41  ;;  %v253_v56 = vadd.f32 %v441_v18, %v220_v42  ;;  %v254_v57 = vadd.f32 %v441_v18, %v221_v43  ;;  %v222_v58 = vmul.f32 %v190_v44, %v59_v3  ;;  %v69_v41 = vld [vmem:[#allocation6 + $0xc0] sm:$0xff]  ;;  %v70_v42 = vld [vmem:[#allocation6 + $0xc8] sm:$0xff]  ;;  %v71_v43 = vld [vmem:[#allocation6 + $0xd0] sm:$0xff] }
  0x2c   :  { %281 = vst [vmem:[#allocation7 + $0x40] sm:$0xff] %v249_v48  ;;  %v223_v59 = vmul.f32 %v191_v54, %v60_v10  ;;  %v94_v60 = vmul.f32 %v428_v6, %v61_v45  ;;  %v95_v61 = vmul.f32 %v428_v6, %v62_v46  ;;  %v96_v62 = vmul.f32 %v428_v6, %v63_v47 }
  0x2d   :  { %282 = vst [vmem:[#allocation7 + $0x48] sm:$0xff] %v250_v52  ;;  %v255_v0 = vadd.f32 %v441_v18, %v222_v58  ;;  %v97_v1 = vmul.f32 %v428_v6, %v64_v49  ;;  %v98_v2 = vmul.f32 %v428_v6, %v65_v50  ;;  %v99_v4 = vmul.f32 %v428_v6, %v66_v51 }
  0x2e   :  { %283 = vst [vmem:[#allocation7 + $0x50] sm:$0xff] %v251_v53  ;;  %v256_v3 = vadd.f32 %v441_v18, %v223_v59  ;;  %v127_v7 = vadd.f32 %v431_v8, %v94_v60  ;;  %v128_v9 = vadd.f32 %v431_v8, %v95_v61  ;;  %v129_v10 = vadd.f32 %v431_v8, %v96_v62  ;;  %v75_v59 = vld [vmem:[#allocation6 + $0xf0] sm:$0xff] }
  0x2f   :  { %284 = vst [vmem:[#allocation7 + $0x58] sm:$0xff] %v252_v55  ;;  %v130_v11 = vadd.f32 %v431_v8, %v97_v1  ;;  %v131_v13 = vadd.f32 %v431_v8, %v98_v2  ;;  %v132_v14 = vadd.f32 %v431_v8, %v99_v4  ;;  %v100_v15 = vmul.f32 %v428_v6, %v67_v63  ;;  %v76_v1 = vld [vmem:[#allocation6 + $0xf8] sm:$0xff] }
  0x30   :  { %285 = vst [vmem:[#allocation7 + $0x60] sm:$0xff] %v253_v56  ;;  %v159_v16 = vmul.f32 %v127_v7, %v61_v45  ;;  %v160_v17 = vmul.f32 %v128_v9, %v62_v46  ;;  %v161_v19 = vmul.f32 %v129_v10, %v63_v47  ;;  %v101_v20 = vmul.f32 %v428_v6, %v68_v5 }
  0x31   :  { %286 = vst [vmem:[#allocation7 + $0x68] sm:$0xff] %v254_v57  ;;  %v162_v21 = vmul.f32 %v130_v11, %v64_v49  ;;  %v163_v22 = vmul.f32 %v131_v13, %v65_v50  ;;  %v164_v23 = vmul.f32 %v132_v14, %v66_v51  ;;  %v133_v24 = vadd.f32 %v431_v8, %v100_v15 }
  0x32   :  { %287 = vst [vmem:[#allocation7 + $0x70] sm:$0xff] %v255_v0  ;;  %v192_v25 = vadd.f32 %v435_v12, %v159_v16  ;;  %v193_v26 = vadd.f32 %v435_v12, %v160_v17  ;;  %v194_v27 = vadd.f32 %v435_v12, %v161_v19  ;;  %v134_v28 = vadd.f32 %v431_v8, %v101_v20 }
  0x33   :  { %288 = vst [vmem:[#allocation7 + $0x78] sm:$0xff] %v256_v3  ;;  %v195_v29 = vadd.f32 %v435_v12, %v162_v21  ;;  %v196_v30 = vadd.f32 %v435_v12, %v163_v22  ;;  %v197_v31 = vadd.f32 %v435_v12, %v164_v23  ;;  %v165_v32 = vmul.f32 %v133_v24, %v67_v63 }
  0x34   :  { %v224_v33 = vmul.f32 %v192_v25, %v61_v45  ;;  %v225_v34 = vmul.f32 %v193_v26, %v62_v46  ;;  %v226_v35 = vmul.f32 %v194_v27, %v63_v47  ;;  %v166_v36 = vmul.f32 %v134_v28, %v68_v5  ;;  %v72_v45 = vld [vmem:[#allocation6 + $0xd8] sm:$0xff]  ;;  %v73_v46 = vld [vmem:[#allocation6 + $0xe0] sm:$0xff]  ;;  %v74_v47 = vld [vmem:[#allocation6 + $0xe8] sm:$0xff] }
  0x35   :  { %v227_v37 = vmul.f32 %v195_v29, %v64_v49  ;;  %v228_v38 = vmul.f32 %v196_v30, %v65_v50  ;;  %v229_v39 = vmul.f32 %v197_v31, %v66_v51  ;;  %v198_v40 = vadd.f32 %v435_v12, %v165_v32 }
  0x36   :  { %v257_v44 = vadd.f32 %v441_v18, %v224_v33  ;;  %v258_v48 = vadd.f32 %v441_v18, %v225_v34  ;;  %v259_v52 = vadd.f32 %v441_v18, %v226_v35  ;;  %v199_v53 = vadd.f32 %v435_v12, %v166_v36 }
  0x37   :  { %v260_v54 = vadd.f32 %v441_v18, %v227_v37  ;;  %v261_v49 = vadd.f32 %v441_v18, %v228_v38  ;;  %v262_v50 = vadd.f32 %v441_v18, %v229_v39  ;;  %v230_v51 = vmul.f32 %v198_v40, %v67_v63 }
  0x38   :  { %289 = vst [vmem:[#allocation7 + $0x80] sm:$0xff] %v257_v44  ;;  %v231_v55 = vmul.f32 %v199_v53, %v68_v5  ;;  %v102_v56 = vmul.f32 %v428_v6, %v69_v41  ;;  %v103_v57 = vmul.f32 %v428_v6, %v70_v42  ;;  %v104_v58 = vmul.f32 %v428_v6, %v71_v43 }
  0x39   :  { %290 = vst [vmem:[#allocation7 + $0x88] sm:$0xff] %v258_v48  ;;  %v263_v60 = vadd.f32 %v441_v18, %v230_v51  ;;  %v105_v61 = vmul.f32 %v428_v6, %v72_v45  ;;  %v106_v62 = vmul.f32 %v428_v6, %v73_v46  ;;  %v107_v0 = vmul.f32 %v428_v6, %v74_v47 }
  0x3a   :  { %291 = vst [vmem:[#allocation7 + $0x90] sm:$0xff] %v259_v52  ;;  %v264_v63 = vadd.f32 %v441_v18, %v231_v55  ;;  %v135_v2 = vadd.f32 %v431_v8, %v102_v56  ;;  %v136_v4 = vadd.f32 %v431_v8, %v103_v57  ;;  %v137_v5 = vadd.f32 %v431_v8, %v104_v58 }
  0x3b   :  { %292 = vst [vmem:[#allocation7 + $0x98] sm:$0xff] %v260_v54  ;;  %v138_v3 = vadd.f32 %v431_v8, %v105_v61  ;;  %v139_v7 = vadd.f32 %v431_v8, %v106_v62  ;;  %v140_v9 = vadd.f32 %v431_v8, %v107_v0  ;;  %v108_v10 = vmul.f32 %v428_v6, %v75_v59 }
  0x3c   :  { %293 = vst [vmem:[#allocation7 + $0xa0] sm:$0xff] %v261_v49  ;;  %v167_v11 = vmul.f32 %v135_v2, %v69_v41  ;;  %v168_v13 = vmul.f32 %v136_v4, %v70_v42  ;;  %v169_v14 = vmul.f32 %v137_v5, %v71_v43  ;;  %v109_v15 = vmul.f32 %v428_v6, %v76_v1 }
  0x3d   :  { %294 = vst [vmem:[#allocation7 + $0xa8] sm:$0xff] %v262_v50  ;;  %v170_v16 = vmul.f32 %v138_v3, %v72_v45  ;;  %v171_v17 = vmul.f32 %v139_v7, %v73_v46  ;;  %v172_v19 = vmul.f32 %v140_v9, %v74_v47  ;;  %v141_v20 = vadd.f32 %v431_v8, %v108_v10 }
  0x3e   :  { %295 = vst [vmem:[#allocation7 + $0xb0] sm:$0xff] %v263_v60  ;;  %v200_v21 = vadd.f32 %v435_v12, %v167_v11  ;;  %v201_v22 = vadd.f32 %v435_v12, %v168_v13  ;;  %v202_v23 = vadd.f32 %v435_v12, %v169_v14  ;;  %v142_v24 = vadd.f32 %v431_v8, %v109_v15 }
  0x3f   :  { %296 = vst [vmem:[#allocation7 + $0xb8] sm:$0xff] %v264_v63  ;;  %v203_v25 = vadd.f32 %v435_v12, %v170_v16  ;;  %v204_v6 = vadd.f32 %v435_v12, %v171_v17  ;;  %v205_v26 = vadd.f32 %v435_v12, %v172_v19  ;;  %v173_v27 = vmul.f32 %v141_v20, %v75_v59 }
  0x40   :  { %v232_v28 = vmul.f32 %v200_v21, %v69_v41  ;;  %v233_v29 = vmul.f32 %v201_v22, %v70_v42  ;;  %v234_v30 = vmul.f32 %v202_v23, %v71_v43  ;;  %v174_v31 = vmul.f32 %v142_v24, %v76_v1 }
  0x41   :  { %v235_v32 = vmul.f32 %v203_v25, %v72_v45  ;;  %v236_v33 = vmul.f32 %v204_v6, %v73_v46  ;;  %v237_v34 = vmul.f32 %v205_v26, %v74_v47  ;;  %v206_v35 = vadd.f32 %v435_v12, %v173_v27 }
  0x42   :  { %v265_v36 = vadd.f32 %v441_v18, %v232_v28  ;;  %v266_v8 = vadd.f32 %v441_v18, %v233_v29  ;;  %v267_v37 = vadd.f32 %v441_v18, %v234_v30  ;;  %v207_v38 = vadd.f32 %v435_v12, %v174_v31 }
  0x43   :  { %v268_v39 = vadd.f32 %v441_v18, %v235_v32  ;;  %v238_v40 = vmul.f32 %v206_v35, %v75_v59  ;;  %v269_v41 = vadd.f32 %v441_v18, %v236_v33  ;;  %v270_v43 = vadd.f32 %v441_v18, %v237_v34 }
  0x44   :  { %297 = vst [vmem:[#allocation7 + $0xc0] sm:$0xff] %v265_v36  ;;  %v239_v42 = vmul.f32 %v207_v38, %v76_v1 }
  0x45   :  { %298 = vst [vmem:[#allocation7 + $0xc8] sm:$0xff] %v266_v8  ;;  %v271_v44 = vadd.f32 %v441_v18, %v238_v40 }
  0x46   :  { %299 = vst [vmem:[#allocation7 + $0xd0] sm:$0xff] %v267_v37  ;;  %v272_v12 = vadd.f32 %v441_v18, %v239_v42 }
  0x47   :  { %300 = vst [vmem:[#allocation7 + $0xd8] sm:$0xff] %v268_v39 }
  0x48   :  { %301 = vst [vmem:[#allocation7 + $0xe0] sm:$0xff] %v269_v41 }
  0x49   :  { %302 = vst [vmem:[#allocation7 + $0xe8] sm:$0xff] %v270_v43 }
  0x4a   :  { %303 = vst [vmem:[#allocation7 + $0xf0] sm:$0xff] %v271_v44 }
  0x4b   :  { %304 = vst [vmem:[#allocation7 + $0xf8] sm:$0xff] %v272_v12 }
  0x4c   :  { %317 = dma.vmem_to_hbm [thread:$0]  %s310_s23, 4096, %s312_s26, [#allocation4], %s401_s18, %s401_s18, %s402_s19  }
  0x4d   :  { %397 = dma.done.wait [#allocation4], 4096  }
  0x4e   :  { %398 = vsyncadd [#allocation4], 4294963200 }
  0x4f   :  { %322 = vsyncpa [#allocation3], 1 }
  0x50   :  { %323 = vsyncpa [#allocation4], 1 }
  0x51   :  { %324 = vsyncpa [#allocation5], 1 }

</bundles_post_ra>
